<compile_context>
chip_gen: v5e
topology: v5e:2x2
jax: 0.10.0
libtpu: 0.0.40
codegen_flags: <defaults>
</compile_context>

<pallas_src>
import jax
import jax.numpy as jnp
from jax import lax
from jax.experimental import pallas as pl
from jax.experimental.pallas import tpu as pltpu


_EPS = 1e-12  # F.normalize default eps (clamp on the L2 norm)
_VMEM = pl.BlockSpec(memory_space=pltpu.MemorySpace.VMEM)


def _round_up(x, m):
    return ((x + m - 1) // m) * m


# ----------------------------------------------------------------------------
# In-kernel math helpers
# ----------------------------------------------------------------------------
def _proj_normalize(x, w1, b1, w2, b2):
    """Linear -> ReLU -> Linear -> F.normalize(dim=-1) on VMEM-resident values.

    Weights are pre-cast bf16 (full-rate MXU); activations are cast per matmul.
    Bias add / ReLU / normalize stay f32 (f32 accumulation via
    preferred_element_type; no bf16 VPU/EUP dependence -> v5e-safe).
    """
    h = jnp.dot(x.astype(jnp.bfloat16), w1, preferred_element_type=jnp.float32) + b1
    h = jnp.maximum(h, 0.0)                                   # ReLU (f32, VPU)
    y = jnp.dot(h.astype(jnp.bfloat16), w2, preferred_element_type=jnp.float32) + b2
    # F.normalize: y / max(||y||, eps)  ==  y * rsqrt(max(||y||^2, eps^2))
    sq = jnp.sum(y * y, axis=-1, keepdims=True)
    return y * lax.rsqrt(jnp.maximum(sq, _EPS * _EPS))


# ----------------------------------------------------------------------------
# Pallas kernels
# ----------------------------------------------------------------------------
def _proj_norm_kernel(x_ref, w1_ref, b1_ref, w2_ref, b2_ref, o_ref):
    """Standalone projection head (used by encode_audio / encode_text)."""
    o_ref[...] = _proj_normalize(
        x_ref[...], w1_ref[...], b1_ref[...], w2_ref[...], b2_ref[...]
    ).astype(o_ref.dtype)


def _glap_fused_kernel(af_ref, tf_ref,
                       aw1_ref, ab1_ref, aw2_ref, ab2_ref,
                       tw1_ref, tb1_ref, tw2_ref, tb2_ref,
                       a_out_ref, t_out_ref, s_out_ref,
                       a_emb_sc):
    """Fused GLAP head over a (Ba-tile, Bt-tile) grid point.

    The audio embedding of the current Ba tile is computed once (on the first
    Bt tile) into VMEM scratch and reused for every score tile in that row.
    """
    j = pl.program_id(1)

    @pl.when(j == 0)
    def _():
        a_emb = _proj_normalize(af_ref[...], aw1_ref[...], ab1_ref[...],
                                aw2_ref[...], ab2_ref[...])
        a_emb_sc[...] = a_emb
        a_out_ref[...] = a_emb.astype(a_out_ref.dtype)

    t_emb = _proj_normalize(tf_ref[...], tw1_ref[...], tb1_ref[...],
                            tw2_ref[...], tb2_ref[...])
    t_out_ref[...] = t_emb.astype(t_out_ref.dtype)

    # score = 100 * (a @ t.T), expressed as a contraction over E (NT form)
    # so the text tile never goes through an explicit transpose.
    s = lax.dot_general(a_emb_sc[...], t_emb,
                        dimension_numbers=(((1,), (1,)), ((), ())),
                        preferred_element_type=jnp.float32)
    s_out_ref[...] = (100.0 * s).astype(s_out_ref.dtype)


# ----------------------------------------------------------------------------
# Wrappers
# ----------------------------------------------------------------------------
def proj_normalize(x, w1, b1, w2, b2):
    """Single-tile projection head (B is small; output last dim = E = lane-dense)."""
    B = x.shape[0]
    E = w2.shape[1]
    return pl.pallas_call(
        _proj_norm_kernel,
        out_shape=jax.ShapeDtypeStruct((B, E), jnp.float32),
        in_specs=[_VMEM] * 5,
        out_specs=_VMEM,
    )(x, w1, b1, w2, b2)


def glap_fused(audio_feats, text_feats, a_params, t_params,
               tile_ba=256, tile_bt=256):
    """One pallas_call over a batch grid: returns (audio_emb, text_emb, score)."""
    Ba, Da = audio_feats.shape
    Bt, Dt = text_feats.shape
    aw1, ab1, aw2, ab2 = a_params
    tw1, tb1, tw2, tb2 = t_params
    E = aw2.shape[1]

    # Tile sizes: sublane-aligned Ba tiles; Bt tiles padded to >=128 so the
    # score tile's last dim is lane-dense (unmasked vst).  Defaults (256x256)
    # fit comfortably in v7x's 64 MiB VMEM and fill the MXU on all chips.
    tile_ba = min(tile_ba, _round_up(Ba, 8))
    tile_bt = min(tile_bt, _round_up(Bt, 128))
    Ba_p = _round_up(Ba, tile_ba)
    Bt_p = _round_up(Bt, tile_bt)
    if Ba_p != Ba:
        audio_feats = jnp.pad(audio_feats, ((0, Ba_p - Ba), (0, 0)))
    if Bt_p != Bt:
        text_feats = jnp.pad(text_feats, ((0, Bt_p - Bt), (0, 0)))

    grid = (Ba_p // tile_ba, Bt_p // tile_bt)
    const = lambda i, j: (0, 0)   # weights/biases stay VMEM-resident

    in_specs = [
        pl.BlockSpec((tile_ba, Da), lambda i, j: (i, 0)),   # audio feature tile
        pl.BlockSpec((tile_bt, Dt), lambda i, j: (j, 0)),   # text  feature tile
        pl.BlockSpec((Da, E), const), pl.BlockSpec((1, E), const),
        pl.BlockSpec((E, E), const), pl.BlockSpec((1, E), const),
        pl.BlockSpec((Dt, E), const), pl.BlockSpec((1, E), const),
        pl.BlockSpec((E, E), const), pl.BlockSpec((1, E), const),
    ]
    out_specs = (
        pl.BlockSpec((tile_ba, E), lambda i, j: (i, 0)),       # audio embeds
        pl.BlockSpec((tile_bt, E), lambda i, j: (j, 0)),       # text embeds
        pl.BlockSpec((tile_ba, tile_bt), lambda i, j: (i, j)),  # score
    )
    out_shapes = (
        jax.ShapeDtypeStruct((Ba_p, E), jnp.float32),
        jax.ShapeDtypeStruct((Bt_p, E), jnp.float32),
        jax.ShapeDtypeStruct((Ba_p, Bt_p), jnp.float32),
    )

    a_emb, t_emb, score = pl.pallas_call(
        _glap_fused_kernel,
        out_shape=out_shapes,
        grid_spec=pltpu.PrefetchScalarGridSpec(
            num_scalar_prefetch=0,
            grid=grid,
            in_specs=in_specs,
            out_specs=out_specs,
            scratch_shapes=[pltpu.VMEM((tile_ba, E), jnp.float32)],
        ),
        # Ba axis parallel (shards across v7x's 2 TCs); Bt axis must stay
        # sequential ("arbitrary") because a_emb scratch is reused across it.
        compiler_params=pltpu.CompilerParams(
            dimension_semantics=("parallel", "arbitrary")),
    )(audio_feats, text_feats, aw1, ab1, aw2, ab2, tw1, tb1, tw2, tb2)

    return a_emb[:Ba], t_emb[:Bt], score[:Ba, :Bt]


# ----------------------------------------------------------------------------
# GLAP forward (parameters initialized deterministically in-script)
# ----------------------------------------------------------------------------
class GLAPPallas:
    def __init__(self, key, audio_dim=256, text_dim=128, embed_size=128,
                 wav_len=256, vocab=50):
        self.audio_dim = audio_dim
        self.text_dim = text_dim
        self.embed_size = embed_size

        ks = jax.random.split(key, 10)
        s = 0.02

        # --- stub "encoders" (glue; real encoders are pretrained checkpoints) ---
        # TODO(synk): Dasheng audio transformer and Sonar text encoder are external
        # pretrained models; replaced with deterministic feature extractors.
        self.audio_enc_w = s * jax.random.normal(ks[0], (wav_len, audio_dim), jnp.float32)
        self.text_embed_table = s * jax.random.normal(ks[1], (vocab, text_dim), jnp.float32)

        # --- audio_proj: Linear(audio_dim, E) -> ReLU -> Linear(E, E) ---
        # PyTorch Linear weight is (out, in); stored pre-transposed to (in, out)
        # and pre-cast to bf16 once (documented precision choice: bf16 MXU
        # operands, f32 accumulation/epilogue).  Biases stay f32.
        self.a_w1 = (s * jax.random.normal(ks[2], (audio_dim, embed_size), jnp.float32)).astype(jnp.bfloat16)
        self.a_b1 = s * jax.random.normal(ks[3], (1, embed_size), jnp.float32)
        self.a_w2 = (s * jax.random.normal(ks[4], (embed_size, embed_size), jnp.float32)).astype(jnp.bfloat16)
        self.a_b2 = s * jax.random.normal(ks[5], (1, embed_size), jnp.float32)

        # --- text_proj: Linear(text_dim, E) -> ReLU -> Linear(E, E) ---
        self.t_w1 = (s * jax.random.normal(ks[6], (text_dim, embed_size), jnp.float32)).astype(jnp.bfloat16)
        self.t_b1 = s * jax.random.normal(ks[7], (1, embed_size), jnp.float32)
        self.t_w2 = (s * jax.random.normal(ks[8], (embed_size, embed_size), jnp.float32)).astype(jnp.bfloat16)
        self.t_b2 = s * jax.random.normal(ks[9], (1, embed_size), jnp.float32)

        # One jitted fused path shared by forward / score_forward / demo driver.
        self._fwd_all = jax.jit(self._forward_all)
        self._enc_audio = jax.jit(self._encode_audio_impl)
        self._enc_text = jax.jit(self._encode_text_impl)

    @property
    def a_params(self):
        return (self.a_w1, self.a_b1, self.a_w2, self.a_b2)

    @property
    def t_params(self):
        return (self.t_w1, self.t_b1, self.t_w2, self.t_b2)

    # encoder stubs (plain JAX glue)
    def _audio_encoder(self, audio):          # (B, T) -> (B, audio_dim)
        return jnp.tanh(audio @ self.audio_enc_w)

    def _text_encoder(self, text_tokens):     # (B, L) int -> (B, text_dim) mean-pool
        return jnp.mean(self.text_embed_table[text_tokens], axis=1)

    # fused head (single pallas_call, all three outputs)
    def _forward_all(self, audio, text_tokens):
        a_feats = self._audio_encoder(audio)
        t_feats = self._text_encoder(text_tokens)
        return glap_fused(a_feats, t_feats, self.a_params, self.t_params)

    def forward_and_score(self, audio, text_tokens):
        return self._fwd_all(audio, text_tokens)

    def forward(self, audio, text_tokens):
        audio_embeds, text_embeds, _ = self._fwd_all(audio, text_tokens)
        return audio_embeds, text_embeds

    def score_forward(self, audio, text_tokens):
        _, _, sim = self._fwd_all(audio, text_tokens)
        return sim

    # standalone encoders (single-head kernel)
    def _encode_audio_impl(self, audio):
        return proj_normalize(self._audio_encoder(audio), *self.a_params)

    def _encode_text_impl(self, text_tokens):
        return proj_normalize(self._text_encoder(text_tokens), *self.t_params)

    def encode_audio(self, audio):
        return self._enc_audio(audio)

    def encode_text(self, text_tokens):
        return self._enc_text(text_tokens)


# ----------------------------------------------------------------------------
def _reference(model, audio, text_tokens):
    """Pure-JAX reference of the same math (bf16 MXU operands, f32 epilogue —
    mirrors the kernel's documented precision choice; in exact arithmetic this
    equals the PyTorch Linear->ReLU->Linear->F.normalize->100*a@t.T)."""
    def proj_ref(x, w1, b1, w2, b2):
        h = jnp.dot(x.astype(jnp.bfloat16), w1, preferred_element_type=jnp.float32) + b1
        h = jnp.maximum(h, 0.0)
        y = jnp.dot(h.astype(jnp.bfloat16), w2, preferred_element_type=jnp.float32) + b2
        sq = jnp.sum(y * y, axis=-1, keepdims=True)
        return y * lax.rsqrt(jnp.maximum(sq, _EPS * _EPS))

    a = proj_ref(model._audio_encoder(audio), *model.a_params)
    t = proj_ref(model._text_encoder(text_tokens), *model.t_params)
    return a, t, 100.0 * (a @ t.T)


if __name__ == "__main__":
    key = jax.random.PRNGKey(0)
    k_model, k_audio, k_text = jax.random.split(key, 3)

    B, T, L = 8, 256, 8
    model = GLAPPallas(k_model, audio_dim=256, text_dim=128, embed_size=128,
                       wav_len=T, vocab=50)

    audio = jax.random.normal(k_audio, (B, T), jnp.float32)          # waveform
    text_tokens = jax.random.randint(k_text, (B, L), 0, 50)          # token ids

    # fused path: one jitted pallas_call yields embeddings AND score
    audio_emb, text_emb, sim = model.forward_and_score(audio, text_tokens)
    # standalone encode_* path (single-head kernel)
    a_only = model.encode_audio(audio)
    t_only = model.encode_text(text_tokens)
    jax.block_until_ready((audio_emb, text_emb, sim, a_only, t_only))

    a_ref, t_ref, s_ref = _reference(model, audio, text_tokens)
    assert jnp.allclose(audio_emb, a_ref, atol=2e-3, rtol=2e-3)
    assert jnp.allclose(text_emb, t_ref, atol=2e-3, rtol=2e-3)
    assert jnp.allclose(sim, s_ref, atol=5e-2, rtol=1e-3)
    assert jnp.allclose(a_only, audio_emb, atol=1e-5)
    assert jnp.allclose(t_only, text_emb, atol=1e-5)
    assert audio_emb.shape == (B, 128) and text_emb.shape == (B, 128)
    assert sim.shape == (B, B)

    # API-parity wrappers share the same compiled call (no extra kernel builds).
    a2, t2 = model.forward(audio, text_tokens)
    s2 = model.score_forward(audio, text_tokens)
    jax.block_until_ready((a2, t2, s2))
    assert jnp.allclose(a2, audio_emb) and jnp.allclose(t2, text_emb)
    assert jnp.allclose(s2, sim)

    print("KERNEL_OK")
</pallas_src>

<mosaic_0001>
module attributes {stable_mosaic.version = 11 : i64} {
  func.func @_glap_fused_kernel(%arg0: i32, %arg1: i32, %arg2: memref<8x256xf32, #tpu.memory_space<vmem>>, %arg3: memref<128x128xf32, #tpu.memory_space<vmem>>, %arg4: memref<256x128xbf16, #tpu.memory_space<vmem>>, %arg5: memref<1x128xf32, #tpu.memory_space<vmem>>, %arg6: memref<128x128xbf16, #tpu.memory_space<vmem>>, %arg7: memref<1x128xf32, #tpu.memory_space<vmem>>, %arg8: memref<128x128xbf16, #tpu.memory_space<vmem>>, %arg9: memref<1x128xf32, #tpu.memory_space<vmem>>, %arg10: memref<128x128xbf16, #tpu.memory_space<vmem>>, %arg11: memref<1x128xf32, #tpu.memory_space<vmem>>, %arg12: memref<8x128xf32, #tpu.memory_space<vmem>>, %arg13: memref<128x128xf32, #tpu.memory_space<vmem>>, %arg14: memref<8x128xf32, #tpu.memory_space<vmem>>, %arg15: memref<8x128xf32, #tpu.memory_space<vmem>>) attributes {dimension_semantics = [#tpu.dimension_semantics<parallel>, #tpu.dimension_semantics<arbitrary>], iteration_bounds = array<i64: 1, 1>, scalar_prefetch = 0 : i64, scratch_operands = 1 : i64, tpu.core_type = #tpu.core_type<tc>, window_params = [{transform_indices = @transform_0, window_bounds = array<i64: 8, 256>}, {transform_indices = @transform_1, window_bounds = array<i64: 128, 128>}, {pipeline_mode = #tpu.pipeline_mode<synchronous>, transform_indices = @transform_2, window_bounds = array<i64: 256, 128>}, {pipeline_mode = #tpu.pipeline_mode<synchronous>, transform_indices = @transform_3, window_bounds = array<i64: 1, 128>}, {pipeline_mode = #tpu.pipeline_mode<synchronous>, transform_indices = @transform_4, window_bounds = array<i64: 128, 128>}, {pipeline_mode = #tpu.pipeline_mode<synchronous>, transform_indices = @transform_5, window_bounds = array<i64: 1, 128>}, {pipeline_mode = #tpu.pipeline_mode<synchronous>, transform_indices = @transform_6, window_bounds = array<i64: 128, 128>}, {pipeline_mode = #tpu.pipeline_mode<synchronous>, transform_indices = @transform_7, window_bounds = array<i64: 1, 128>}, {pipeline_mode = #tpu.pipeline_mode<synchronous>, transform_indices = @transform_8, window_bounds = array<i64: 128, 128>}, {pipeline_mode = #tpu.pipeline_mode<synchronous>, transform_indices = @transform_9, window_bounds = array<i64: 1, 128>}, {transform_indices = @transform_10, window_bounds = array<i64: 8, 128>}, {transform_indices = @transform_11, window_bounds = array<i64: 128, 128>}, {transform_indices = @transform_12, window_bounds = array<i64: 8, 128>}]} {
    %c0_i32 = arith.constant 0 : i32
    %0 = arith.cmpi eq, %arg1, %c0_i32 : i32
    %1 = arith.extui %0 : i1 to i32
    %c0_i32_0 = arith.constant 0 : i32
    %2 = arith.cmpi ne, %1, %c0_i32_0 : i32
    scf.if %2 {
      %c0_22 = arith.constant 0 : index
      %c0_23 = arith.constant 0 : index
      %32 = vector.load %arg2[%c0_22, %c0_23] : memref<8x256xf32, #tpu.memory_space<vmem>>, vector<8x256xf32>
      %c0_24 = arith.constant 0 : index
      %c0_25 = arith.constant 0 : index
      %33 = vector.load %arg4[%c0_24, %c0_25] : memref<256x128xbf16, #tpu.memory_space<vmem>>, vector<256x128xbf16>
      %c0_26 = arith.constant 0 : index
      %c0_27 = arith.constant 0 : index
      %34 = vector.load %arg5[%c0_26, %c0_27] : memref<1x128xf32, #tpu.memory_space<vmem>>, vector<1x128xf32>
      %c0_28 = arith.constant 0 : index
      %c0_29 = arith.constant 0 : index
      %35 = vector.load %arg6[%c0_28, %c0_29] : memref<128x128xbf16, #tpu.memory_space<vmem>>, vector<128x128xbf16>
      %c0_30 = arith.constant 0 : index
      %c0_31 = arith.constant 0 : index
      %36 = vector.load %arg7[%c0_30, %c0_31] : memref<1x128xf32, #tpu.memory_space<vmem>>, vector<1x128xf32>
      %37 = arith.truncf %32 : vector<8x256xf32> to vector<8x256xbf16>
      %cst_32 = arith.constant dense<0.000000e+00> : vector<8x128xf32>
      %38 = tpu.matmul %37, %33, %cst_32 {dimension_numbers = #tpu.dot_dimension_numbers<[1], [0], [0], [1], [0, 0, 1, 1], [], []>} : vector<8x256xbf16>, vector<256x128xbf16>, vector<8x128xf32> -> vector<8x128xf32>
      %39 = vector.broadcast %34 : vector<1x128xf32> to vector<8x128xf32>
      %40 = arith.addf %38, %39 : vector<8x128xf32>
      %cst_33 = arith.constant 0.000000e+00 : f32
      %41 = vector.broadcast %cst_33 : f32 to vector<8x128xf32>
      %42 = arith.maximumf %40, %41 : vector<8x128xf32>
      %43 = arith.truncf %42 : vector<8x128xf32> to vector<8x128xbf16>
      %cst_34 = arith.constant dense<0.000000e+00> : vector<8x128xf32>
      %44 = tpu.matmul %43, %35, %cst_34 {dimension_numbers = #tpu.dot_dimension_numbers<[1], [0], [0], [1], [0, 0, 1, 1], [], []>} : vector<8x128xbf16>, vector<128x128xbf16>, vector<8x128xf32> -> vector<8x128xf32>
      %45 = vector.broadcast %36 : vector<1x128xf32> to vector<8x128xf32>
      %46 = arith.addf %44, %45 : vector<8x128xf32>
      %47 = arith.mulf %46, %46 : vector<8x128xf32>
      %cst_35 = arith.constant dense<0.000000e+00> : vector<8xf32>
      %48 = vector.multi_reduction <add>, %47, %cst_35 [1] : vector<8x128xf32> to vector<8xf32>
      %49 = vector.shape_cast %48 : vector<8xf32> to vector<8x1xf32>
      %cst_36 = arith.constant 1.000000e-24 : f32
      %50 = vector.broadcast %cst_36 : f32 to vector<8x1xf32>
      %51 = arith.maximumf %49, %50 : vector<8x1xf32>
      %52 = math.rsqrt %51 : vector<8x1xf32>
      %53 = vector.broadcast %52 : vector<8x1xf32> to vector<8x128xf32>
      %54 = arith.mulf %46, %53 : vector<8x128xf32>
      %c0_37 = arith.constant 0 : index
      %c0_38 = arith.constant 0 : index
      %55 = vector.load %arg15[%c0_37, %c0_38] : memref<8x128xf32, #tpu.memory_space<vmem>>, vector<8x128xf32>
      tpu.vector_store %arg15[%c0_37, %c0_38], %54 {strides = array<i32>} : memref<8x128xf32, #tpu.memory_space<vmem>>, vector<8x128xf32>,
      %c0_39 = arith.constant 0 : index
      %c0_40 = arith.constant 0 : index
      %56 = vector.load %arg12[%c0_39, %c0_40] : memref<8x128xf32, #tpu.memory_space<vmem>>, vector<8x128xf32>
      tpu.vector_store %arg12[%c0_39, %c0_40], %54 {strides = array<i32>} : memref<8x128xf32, #tpu.memory_space<vmem>>, vector<8x128xf32>,
    } else {
    }
    %c0 = arith.constant 0 : index
    %c0_1 = arith.constant 0 : index
    %3 = vector.load %arg3[%c0, %c0_1] : memref<128x128xf32, #tpu.memory_space<vmem>>, vector<128x128xf32>
    %c0_2 = arith.constant 0 : index
    %c0_3 = arith.constant 0 : index
    %4 = vector.load %arg8[%c0_2, %c0_3] : memref<128x128xbf16, #tpu.memory_space<vmem>>, vector<128x128xbf16>
    %c0_4 = arith.constant 0 : index
    %c0_5 = arith.constant 0 : index
    %5 = vector.load %arg9[%c0_4, %c0_5] : memref<1x128xf32, #tpu.memory_space<vmem>>, vector<1x128xf32>
    %c0_6 = arith.constant 0 : index
    %c0_7 = arith.constant 0 : index
    %6 = vector.load %arg10[%c0_6, %c0_7] : memref<128x128xbf16, #tpu.memory_space<vmem>>, vector<128x128xbf16>
    %c0_8 = arith.constant 0 : index
    %c0_9 = arith.constant 0 : index
    %7 = vector.load %arg11[%c0_8, %c0_9] : memref<1x128xf32, #tpu.memory_space<vmem>>, vector<1x128xf32>
    %8 = arith.truncf %3 : vector<128x128xf32> to vector<128x128xbf16>
    %cst = arith.constant dense<0.000000e+00> : vector<128x128xf32>
    %9 = tpu.matmul %8, %4, %cst {dimension_numbers = #tpu.dot_dimension_numbers<[1], [0], [0], [1], [0, 0, 1, 1], [], []>} : vector<128x128xbf16>, vector<128x128xbf16>, vector<128x128xf32> -> vector<128x128xf32>
    %10 = vector.broadcast %5 : vector<1x128xf32> to vector<128x128xf32>
    %11 = arith.addf %9, %10 : vector<128x128xf32>
    %cst_10 = arith.constant 0.000000e+00 : f32
    %12 = vector.broadcast %cst_10 : f32 to vector<128x128xf32>
    %13 = arith.maximumf %11, %12 : vector<128x128xf32>
    %14 = arith.truncf %13 : vector<128x128xf32> to vector<128x128xbf16>
    %cst_11 = arith.constant dense<0.000000e+00> : vector<128x128xf32>
    %15 = tpu.matmul %14, %6, %cst_11 {dimension_numbers = #tpu.dot_dimension_numbers<[1], [0], [0], [1], [0, 0, 1, 1], [], []>} : vector<128x128xbf16>, vector<128x128xbf16>, vector<128x128xf32> -> vector<128x128xf32>
    %16 = vector.broadcast %7 : vector<1x128xf32> to vector<128x128xf32>
    %17 = arith.addf %15, %16 : vector<128x128xf32>
    %18 = arith.mulf %17, %17 : vector<128x128xf32>
    %cst_12 = arith.constant dense<0.000000e+00> : vector<128xf32>
    %19 = vector.multi_reduction <add>, %18, %cst_12 [1] : vector<128x128xf32> to vector<128xf32>
    %20 = vector.shape_cast %19 : vector<128xf32> to vector<128x1xf32>
    %cst_13 = arith.constant 1.000000e-24 : f32
    %21 = vector.broadcast %cst_13 : f32 to vector<128x1xf32>
    %22 = arith.maximumf %20, %21 : vector<128x1xf32>
    %23 = math.rsqrt %22 : vector<128x1xf32>
    %24 = vector.broadcast %23 : vector<128x1xf32> to vector<128x128xf32>
    %25 = arith.mulf %17, %24 : vector<128x128xf32>
    %c0_14 = arith.constant 0 : index
    %c0_15 = arith.constant 0 : index
    %26 = vector.load %arg13[%c0_14, %c0_15] : memref<128x128xf32, #tpu.memory_space<vmem>>, vector<128x128xf32>
    tpu.vector_store %arg13[%c0_14, %c0_15], %25 {strides = array<i32>} : memref<128x128xf32, #tpu.memory_space<vmem>>, vector<128x128xf32>,
    %c0_16 = arith.constant 0 : index
    %c0_17 = arith.constant 0 : index
    %27 = vector.load %arg15[%c0_16, %c0_17] : memref<8x128xf32, #tpu.memory_space<vmem>>, vector<8x128xf32>
    %cst_18 = arith.constant dense<0.000000e+00> : vector<8x128xf32>
    %28 = tpu.matmul %27, %25, %cst_18 {dimension_numbers = #tpu.dot_dimension_numbers<[1], [1], [0], [0], [0, 0, 1, 0], [], []>} : vector<8x128xf32>, vector<128x128xf32>, vector<8x128xf32> -> vector<8x128xf32>
    %cst_19 = arith.constant 1.000000e+02 : f32
    %29 = vector.broadcast %cst_19 : f32 to vector<8x128xf32>
    %30 = arith.mulf %29, %28 : vector<8x128xf32>
    %c0_20 = arith.constant 0 : index
    %c0_21 = arith.constant 0 : index
    %31 = vector.load %arg14[%c0_20, %c0_21] : memref<8x128xf32, #tpu.memory_space<vmem>>, vector<8x128xf32>
    tpu.vector_store %arg14[%c0_20, %c0_21], %30 {strides = array<i32>} : memref<8x128xf32, #tpu.memory_space<vmem>>, vector<8x128xf32>,
    return
  }
  func.func @transform_0(%arg0: i32, %arg1: i32) -> (i32, i32) {
    %c0_i32 = arith.constant 0 : i32
    %c0_i32_0 = arith.constant 0 : i32
    return %arg0, %c0_i32 : i32, i32
  }
  func.func @transform_1(%arg0: i32, %arg1: i32) -> (i32, i32) {
    %c0_i32 = arith.constant 0 : i32
    %c0_i32_0 = arith.constant 0 : i32
    return %arg1, %c0_i32 : i32, i32
  }
  func.func @transform_2(%arg0: i32, %arg1: i32) -> (i32, i32) {
    %c0_i32 = arith.constant 0 : i32
    %c0_i32_0 = arith.constant 0 : i32
    %c0_i32_1 = arith.constant 0 : i32
    return %c0_i32, %c0_i32_0 : i32, i32
  }
  func.func @transform_3(%arg0: i32, %arg1: i32) -> (i32, i32) {
    %c0_i32 = arith.constant 0 : i32
    %c0_i32_0 = arith.constant 0 : i32
    %c0_i32_1 = arith.constant 0 : i32
    return %c0_i32, %c0_i32_0 : i32, i32
  }
  func.func @transform_4(%arg0: i32, %arg1: i32) -> (i32, i32) {
    %c0_i32 = arith.constant 0 : i32
    %c0_i32_0 = arith.constant 0 : i32
    %c0_i32_1 = arith.constant 0 : i32
    return %c0_i32, %c0_i32_0 : i32, i32
  }
  func.func @transform_5(%arg0: i32, %arg1: i32) -> (i32, i32) {
    %c0_i32 = arith.constant 0 : i32
    %c0_i32_0 = arith.constant 0 : i32
    %c0_i32_1 = arith.constant 0 : i32
    return %c0_i32, %c0_i32_0 : i32, i32
  }
  func.func @transform_6(%arg0: i32, %arg1: i32) -> (i32, i32) {
    %c0_i32 = arith.constant 0 : i32
    %c0_i32_0 = arith.constant 0 : i32
    %c0_i32_1 = arith.constant 0 : i32
    return %c0_i32, %c0_i32_0 : i32, i32
  }
  func.func @transform_7(%arg0: i32, %arg1: i32) -> (i32, i32) {
    %c0_i32 = arith.constant 0 : i32
    %c0_i32_0 = arith.constant 0 : i32
    %c0_i32_1 = arith.constant 0 : i32
    return %c0_i32, %c0_i32_0 : i32, i32
  }
  func.func @transform_8(%arg0: i32, %arg1: i32) -> (i32, i32) {
    %c0_i32 = arith.constant 0 : i32
    %c0_i32_0 = arith.constant 0 : i32
    %c0_i32_1 = arith.constant 0 : i32
    return %c0_i32, %c0_i32_0 : i32, i32
  }
  func.func @transform_9(%arg0: i32, %arg1: i32) -> (i32, i32) {
    %c0_i32 = arith.constant 0 : i32
    %c0_i32_0 = arith.constant 0 : i32
    %c0_i32_1 = arith.constant 0 : i32
    return %c0_i32, %c0_i32_0 : i32, i32
  }
  func.func @transform_10(%arg0: i32, %arg1: i32) -> (i32, i32) {
    %c0_i32 = arith.constant 0 : i32
    %c0_i32_0 = arith.constant 0 : i32
    return %arg0, %c0_i32 : i32, i32
  }
  func.func @transform_11(%arg0: i32, %arg1: i32) -> (i32, i32) {
    %c0_i32 = arith.constant 0 : i32
    %c0_i32_0 = arith.constant 0 : i32
    return %arg1, %c0_i32 : i32, i32
  }
  func.func @transform_12(%arg0: i32, %arg1: i32) -> (i32, i32) {
    %c0_i32 = arith.constant 0 : i32
    return %arg0, %arg1 : i32, i32
  }
}

</mosaic_0001>

<bundles_post_ra>
// kernel: _forward_all.1
= control target key start
LH: loop header
LB: loop body
LE: loop exit
PB: predicated region body
PF: predicated region fallthrough
CT: control target
= control target key end

     0   :  { %18 = vsyncpa [#allocation4], 0  ;;  %s1740_s0 = inlined_call_operand.vmem [shape: f32[8,256], index: 0, kind: input, shape index: {}]   ;;  %s1741_s1 = inlined_call_operand.vmem [shape: f32[128,128], index: 1, kind: input, shape index: {}]   ;;  %s1742_s2 = inlined_call_operand.vmem [shape: bf16[256,128], index: 2, kind: input, shape index: {}]   ;;  %s1743_s3 = inlined_call_operand.vmem [shape: f32[1,128], index: 3, kind: input, shape index: {}]   ;;  %s1744_s4 = inlined_call_operand.vmem [shape: bf16[128,128], index: 4, kind: input, shape index: {}]   ;;  %s1745_s5 = inlined_call_operand.vmem [shape: f32[1,128], index: 5, kind: input, shape index: {}]   ;;  %s1746_s6 = inlined_call_operand.vmem [shape: bf16[128,128], index: 6, kind: input, shape index: {}]   ;;  %s1747_s7 = inlined_call_operand.vmem [shape: f32[1,128], index: 7, kind: input, shape index: {}]   ;;  %s1748_s8 = inlined_call_operand.vmem [shape: bf16[128,128], index: 8, kind: input, shape index: {}]   ;;  %s1749_s9 = inlined_call_operand.vmem [shape: f32[1,128], index: 9, kind: input, shape index: {}]   ;;  %s1750_s10 = inlined_call_operand.hbm [shape: f32[8,128], index: 10, kind: output, shape index: {0}]   ;;  %s1751_s11 = inlined_call_operand.vmem [shape: f32[128,128], index: 11, kind: output, shape index: {1}]   ;;  %s1752_s12 = inlined_call_operand.hbm [shape: f32[8,128], index: 12, kind: output, shape index: {2}]  }
   0x1   :  { %v1094_v0 = vld [vmem:[%s1746_s6 + $0x38] sm:$0xff]  ;;  %v1093_v1 = vld [vmem:[%s1746_s6 + $0x30] sm:$0xff] }
   0x2   :  { %415 = vmatpush.bf16.msra.mxu3 %v1094_v0 }
   0x3   :  { %19 = vsyncpa [#allocation6], 0  ;;  %v1092_v2 = vld [vmem:[%s1746_s6 + $0x28] sm:$0xff]  ;;  %v1091_v3 = vld [vmem:[%s1746_s6 + $0x20] sm:$0xff]  ;;  %s1203_s25 = smov [#allocation3]  }
   0x4   :  { %v1090_v4 = vld [vmem:[%s1746_s6 + $0x18] sm:$0xff]  ;;  %v1089_v5 = vld [vmem:[%s1746_s6 + $0x10] sm:$0xff]  ;;  %v1088_v6 = vld [vmem:[%s1746_s6 + $0x8] sm:$0xff]  ;;  %s872_s26 = sshll.u32 %s1203_s25, 4  ;;  %s873_s26 = int_to_ptr.vmem [resolvable:$true] %s872_s26 }
   0x5   :  { %v1087_v7 = vld [vmem:[%s1746_s6] sm:$0xff]  ;;  %v307_v9 = vld [vmem:[%s1741_s1 + $0x8] sm:$0xff]  ;;  %v1070_v11 = vld [vmem:[%s1742_s2 + $0x38] sm:$0xff] }
   0x6   :  { %416 = vmatpush.bf16.msra.mxu3 %v1093_v1  ;;  %v306_v8 = vld [vmem:[%s1741_s1] sm:$0xff]  ;;  %v1078_v12 = vld [vmem:[%s1742_s2 + $0x78] sm:$0xff]  ;;  %197 = vmatpush.bf16.msra.mxu0 %v1070_v11  ;;  %v1069_v13 = vld [vmem:[%s1742_s2 + $0x30] sm:$0xff] }
   0x7   :  { %v356_v10 = vpack.c.bf16 %v307_v9, %v306_v8  ;;  %210 = vmatpush.bf16.msra.mxu1 %v1078_v12  ;;  %v1077_v14 = vld [vmem:[%s1742_s2 + $0x70] sm:$0xff]  ;;  %v1068_v15 = vld [vmem:[%s1742_s2 + $0x28] sm:$0xff]  ;;  %v309_v18 = vld [vmem:[%s1741_s1 + $0x18] sm:$0xff] }
   0x8   :  { %v1076_v16 = vld [vmem:[%s1742_s2 + $0x68] sm:$0xff]  ;;  %v308_v17 = vld [vmem:[%s1741_s1 + $0x10] sm:$0xff]  ;;  %v1067_v20 = vld [vmem:[%s1742_s2 + $0x20] sm:$0xff] }
   0x9   :  { %v357_v19 = vpack.c.bf16 %v309_v18, %v308_v17  ;;  %v1075_v21 = vld [vmem:[%s1742_s2 + $0x60] sm:$0xff]  ;;  %v1066_v22 = vld [vmem:[%s1742_s2 + $0x18] sm:$0xff]  ;;  %v1065_v24 = vld [vmem:[%s1742_s2 + $0x10] sm:$0xff] }
   0xa   :  { %417 = vmatpush.bf16.msra.mxu3 %v1092_v2  ;;  %198 = vmatpush.bf16.msra.mxu0 %v1069_v13  ;;  %v1074_v23 = vld [vmem:[%s1742_s2 + $0x58] sm:$0xff]  ;;  %v1073_v25 = vld [vmem:[%s1742_s2 + $0x50] sm:$0xff]  ;;  %v310_v26 = vld [vmem:[%s1741_s1 + $0x20] sm:$0xff] }
   0xb   :  { %211 = vmatpush.bf16.msra.mxu1 %v1077_v14  ;;  %v311_v27 = vld [vmem:[%s1741_s1 + $0x28] sm:$0xff]  ;;  %v1063_v31 = vld [vmem:[%s1742_s2] sm:$0xff]  ;;  %v312_v37 = vld [vmem:[%s1741_s1 + $0x30] sm:$0xff] }
   0xc   :  { %v1064_v28 = vld [vmem:[%s1742_s2 + $0x8] sm:$0xff]  ;;  %v358_v30 = vpack.c.bf16 %v311_v27, %v310_v26  ;;  %v1071_v32 = vld [vmem:[%s1742_s2 + $0x40] sm:$0xff]  ;;  %v313_v38 = vld [vmem:[%s1741_s1 + $0x38] sm:$0xff] }
   0xd   :  { %v1072_v29 = vld [vmem:[%s1742_s2 + $0x48] sm:$0xff]  ;;  %v44_v33 = vld [vmem:[%s1740_s0] sm:$0xff]  ;;  %v359_v39 = vpack.c.bf16 %v313_v38, %v312_v37  ;;  %v316_v43 = vld [vmem:[%s1741_s1 + $0x50] sm:$0xff] }
   0xe   :  { %418 = vmatpush.bf16.msra.mxu3 %v1091_v3  ;;  %199 = vmatpush.bf16.msra.mxu0 %v1068_v15  ;;  %v45_v34 = vld [vmem:[%s1740_s0 + $0x8] sm:$0xff]  ;;  %v96_v35 = vpack.c.bf16 %v44_v33, %v44_v33  ;;  %v314_v40 = vld [vmem:[%s1741_s1 + $0x40] sm:$0xff]  ;;  %v317_v44 = vld [vmem:[%s1741_s1 + $0x58] sm:$0xff] }
   0xf   :  { %212 = vmatpush.bf16.msra.mxu1 %v1076_v16  ;;  %v97_v36 = vpack.c.bf16 %v45_v34, %v45_v34  ;;  %v315_v41 = vld [vmem:[%s1741_s1 + $0x48] sm:$0xff]  ;;  %v361_v45 = vpack.c.bf16 %v317_v44, %v316_v43  ;;  %v1102_v46 = vld [vmem:[%s1748_s8 + $0x38] sm:$0xff]  ;;  %v1101_v47 = vld [vmem:[%s1748_s8 + $0x30] sm:$0xff] }
  0x10   :  { %v360_v42 = vpack.c.bf16 %v315_v41, %v314_v40  ;;  %v1393_v48 = vld [vmem:[%s1748_s8 + $0x28] sm:$0xff]  ;;  %v318_v49 = vld [vmem:[%s1741_s1 + $0x60] sm:$0xff]  ;;  %v1411_v53 = vld [vmem:[%s1748_s8 + $0x18] sm:$0xff] }
  0x11   :  { %v319_v50 = vld [vmem:[%s1741_s1 + $0x68] sm:$0xff]  ;;  %v1405_v51 = vld [vmem:[%s1748_s8 + $0x20] sm:$0xff]  ;;  %v1417_v54 = vld [vmem:[%s1748_s8 + $0x10] sm:$0xff] }
  0x12   :  { %419 = vmatpush.bf16.msra.mxu3 %v1090_v4  ;;  %200 = vmatpush.bf16.msra.mxu0 %v1067_v20  ;;  %v362_v52 = vpack.c.bf16 %v319_v50, %v318_v49  ;;  %v320_v55 = vld [vmem:[%s1741_s1 + $0x70] sm:$0xff]  ;;  %v321_v56 = vld [vmem:[%s1741_s1 + $0x78] sm:$0xff]  ;;  %v1429_v57 = vld [vmem:[%s1748_s8 + $0x8] sm:$0xff]  ;;  %s874_s1 = sshll.u32 %s1750_s10, 4  ;;  %s875_s1 = int_to_ptr.hbm [resolvable:$true] %s874_s1 }
  0x13   :  { %213 = vmatpush.bf16.msra.mxu1 %v1075_v21  ;;  %v363_v58 = vpack.c.bf16 %v321_v56, %v320_v55  ;;  %v1435_v59 = vld [vmem:[%s1748_s8] sm:$0xff]  ;;  %v1086_v61 = vld [vmem:[%s1744_s4 + $0x38] sm:$0xff]  ;;  %v1085_v63 = vld [vmem:[%s1744_s4 + $0x30] sm:$0xff] }
  0x14   :  { %v1444_v62 = vld [vmem:[%s1747_s7] ss:$0 sm:$0xff]  ;;  %276 = vmatpush.bf16.msra.mxu2 %v1086_v61  ;;  %v1084_v3 = vld [vmem:[%s1744_s4 + $0x28] sm:$0xff]  ;;  %v1082_v9 = vld [vmem:[%s1744_s4 + $0x18] sm:$0xff]  ;;  %s887_s7 = sshll.u32 %s1752_s12, 4  ;;  %s888_s7 = int_to_ptr.hbm [resolvable:$true] %s887_s7 }
  0x15   :  { %v1080_v14 = vld [vmem:[%s1744_s4 + $0x8] sm:$0xff]  ;;  %v1114_v17 = vld [vmem:[%s1743_s3] ss:$0 sm:$0xff] }
  0x16   :  { %420 = vmatpush.bf16.msra.mxu3 %v1089_v5  ;;  %201 = vmatpush.bf16.msra.mxu0 %v1066_v22  ;;  %v1079_v18 = vld [vmem:[%s1744_s4] sm:$0xff] }
  0x17   :  { %214 = vmatpush.bf16.msra.mxu1 %v1074_v23 }
  0x18   :  { %277 = vmatpush.bf16.msra.mxu2 %v1085_v63 }
  0x1a   :  { %421 = vmatpush.bf16.msra.mxu3 %v1088_v6  ;;  %202 = vmatpush.bf16.msra.mxu0 %v1065_v24  ;;  %v1083_v6 = vld [vmem:[%s1744_s4 + $0x20] sm:$0xff] }
  0x1b   :  { %215 = vmatpush.bf16.msra.mxu1 %v1073_v25 }
  0x1c   :  { %278 = vmatpush.bf16.msra.mxu2 %v1084_v3 }
  0x1e   :  { %422 = vmatpush.bf16.msra.mxu3 %v1087_v7  ;;  %203 = vmatpush.bf16.msra.mxu0 %v1064_v28 }
  0x1f   :  { %216 = vmatpush.bf16.msra.mxu1 %v1072_v29 }
  0x20   :  { %279 = vmatpush.bf16.msra.mxu2 %v1083_v6 }
  0x21   :  { %423 = vmatmul.bf16.vlgmr.msra.gmra.mxu3 %v356_v10  ;;  %v1081_v10 = vld [vmem:[%s1744_s4 + $0x10] sm:$0xff] }
  0x22   :  { %204 = vmatpush.bf16.msra.mxu0 %v1063_v31 }
  0x23   :  { %217 = vmatpush.bf16.msra.mxu1 %v1071_v32 }
  0x24   :  { %280 = vmatpush.bf16.msra.mxu2 %v1082_v9 }
  0x25   :  { %205 = vmatmul.bf16.vlgmr.msra.gmra.mxu0 %v96_v35 }
  0x26   :  { %218 = vmatmul.bf16.vlgmr.msra.gmra.mxu1 %v97_v36  ;;  %539 = vmatpush.bf16.msrb.mxu0 %v1102_v46 }
  0x28   :  { %281 = vmatpush.bf16.msra.mxu2 %v1081_v10 }
  0x2a   :  { %540 = vmatpush.bf16.msrb.mxu0 %v1101_v47 }
  0x2c   :  { %282 = vmatpush.bf16.msra.mxu2 %v1080_v14 }
  0x2e   :  { %541 = vmatpush.bf16.msrb.mxu0 %v1393_v48 }
  0x30   :  { %283 = vmatpush.bf16.msra.mxu2 %v1079_v18 }
  0x31   :  { %428 = vmatmul.bf16.gmra.mxu3 %v357_v19 }
  0x32   :  { %542 = vmatpush.bf16.msrb.mxu0 %v1405_v51 }
  0x34   :  { %1103 = vmatpush.bf16.msrb.mxu2 %v1102_v46 }
  0x36   :  { %543 = vmatpush.bf16.msrb.mxu0 %v1411_v53 }
  0x38   :  { %1104 = vmatpush.bf16.msrb.mxu2 %v1101_v47 }
  0x3a   :  { %544 = vmatpush.bf16.msrb.mxu0 %v1417_v54 }
  0x3c   :  { %1105 = vmatpush.bf16.msrb.mxu2 %v1393_v48 }
  0x3e   :  { %545 = vmatpush.bf16.msrb.mxu0 %v1429_v57 }
  0x40   :  { %1106 = vmatpush.bf16.msrb.mxu2 %v1405_v51 }
  0x41   :  { %433 = vmatmul.bf16.gmra.mxu3 %v358_v30 }
  0x42   :  { %546 = vmatpush.bf16.msrb.mxu0 %v1435_v59 }
  0x44   :  { %1107 = vmatpush.bf16.msrb.mxu2 %v1411_v53 }
  0x48   :  { %1108 = vmatpush.bf16.msrb.mxu2 %v1417_v54 }
  0x4c   :  { %1109 = vmatpush.bf16.msrb.mxu2 %v1429_v57 }
  0x50   :  { %1110 = vmatpush.bf16.msrb.mxu2 %v1435_v59 }
  0x51   :  { %438 = vmatmul.bf16.gmra.mxu3 %v359_v39 }
  0x61   :  { %443 = vmatmul.bf16.gmra.mxu3 %v360_v42 }
  0x71   :  { %448 = vmatmul.bf16.gmra.mxu3 %v361_v45 }
  0x81   :  { %453 = vmatmul.bf16.gmra.mxu3 %v362_v52 }
  0x91   :  { %458 = vmatmul.bf16.gmra.mxu3 %v363_v58 }
  0xa2   :  { %v206_v20 = vpop.f32.mrf.mxu0 }
  0xa3   :  { %v207_v21 = vadd.f32 %v1114_v17, %v206_v20  ;;  %v219_v22 = vpop.f32.mrf.mxu1 }
  0xa4   :  { %v424_v60 = vpop.f32.mrf.mxu3 }
  0xa5   :  { %v425_v0 = vadd.f32 %v1444_v62, %v424_v60  ;;  %v220_v24 = vadd.f32 %v219_v22, %v207_v21 }
  0xa7   :  { %v464_v4 = vmax.f32 %v425_v0, 0.0  ;;  %v223_v25 = vmax.f32 %v220_v24, 0.0 }
  0xa9   :  { %v224_v26 = vpack.c.bf16 %v223_v25, %v223_v25 }
  0xaa   :  { %v208_v27 = vpop.f32.mrf.mxu0 }
  0xab   :  { %284 = vmatmul.bf16.vlgmr.msra.gmra.mxu2 %v224_v26  ;;  %v221_v29 = vpop.f32.mrf.mxu1 }
  0xac   :  { %v426_v1 = vpop.f32.mrf.mxu3 }
  0xad   :  { %v427_v2 = vadd.f32 %v1444_v62, %v426_v1 }
  0xaf   :  { %v465_v5 = vmax.f32 %v427_v2, 0.0 }
  0xb1   :  { %v480_v7 = vpack.c.bf16 %v465_v5, %v464_v4 }
  0xb3   :  { %547 = vmatmul.bf16.vlgmr.msrb.gmra.mxu0 %v480_v7 }
  0xb4   :  { %v429_v8 = vpop.f32.mrf.mxu3 }
  0xb5   :  { %v430_v11 = vadd.f32 %v1444_v62, %v429_v8 }
  0xb7   :  { %v466_v15 = vmax.f32 %v430_v11, 0.0 }
  0xbc   :  { %v431_v12 = vpop.f32.mrf.mxu3 }
  0xbd   :  { %v432_v13 = vadd.f32 %v1444_v62, %v431_v12 }
  0xbf   :  { %v467_v16 = vmax.f32 %v432_v13, 0.0 }
  0xc1   :  { %v481_v19 = vpack.c.bf16 %v467_v16, %v466_v15  ;;  %v1115_v16 = vld [vmem:[%s1749_s9] ss:$0 sm:$0xff] }
  0xc3   :  { %552 = vmatmul.bf16.gmra.mxu0 %v481_v19 }
  0xc4   :  { %v434_v23 = vpop.f32.mrf.mxu3 }
  0xc5   :  { %v435_v28 = vadd.f32 %v1444_v62, %v434_v23 }
  0xc7   :  { %v468_v32 = vmax.f32 %v435_v28, 0.0 }
  0xcc   :  { %v436_v30 = vpop.f32.mrf.mxu3 }
  0xcd   :  { %v437_v31 = vadd.f32 %v1444_v62, %v436_v30 }
  0xcf   :  { %v469_v33 = vmax.f32 %v437_v31, 0.0 }
  0xd1   :  { %v482_v34 = vpack.c.bf16 %v469_v33, %v468_v32 }
  0xd3   :  { %557 = vmatmul.bf16.gmra.mxu0 %v482_v34 }
  0xd4   :  { %v439_v35 = vpop.f32.mrf.mxu3 }
  0xd5   :  { %v440_v36 = vadd.f32 %v1444_v62, %v439_v35 }
  0xd7   :  { %v470_v39 = vmax.f32 %v440_v36, 0.0 }
  0xdc   :  { %v441_v37 = vpop.f32.mrf.mxu3 }
  0xdd   :  { %v442_v38 = vadd.f32 %v1444_v62, %v441_v37 }
  0xdf   :  { %v471_v40 = vmax.f32 %v442_v38, 0.0 }
  0xe1   :  { %v483_v41 = vpack.c.bf16 %v471_v40, %v470_v39 }
  0xe3   :  { %562 = vmatmul.bf16.gmra.mxu0 %v483_v41 }
  0xe4   :  { %v444_v42 = vpop.f32.mrf.mxu3 }
  0xe5   :  { %v445_v43 = vadd.f32 %v1444_v62, %v444_v42 }
  0xe7   :  { %v472_v46 = vmax.f32 %v445_v43, 0.0 }
  0xec   :  { %v446_v44 = vpop.f32.mrf.mxu3 }
  0xed   :  { %v447_v45 = vadd.f32 %v1444_v62, %v446_v44 }
  0xef   :  { %v473_v47 = vmax.f32 %v447_v45, 0.0 }
  0xf1   :  { %v484_v48 = vpack.c.bf16 %v473_v47, %v472_v46 }
  0xf3   :  { %567 = vmatmul.bf16.gmra.mxu0 %v484_v48 }
  0xf4   :  { %v449_v49 = vpop.f32.mrf.mxu3 }
  0xf5   :  { %v450_v50 = vadd.f32 %v1444_v62, %v449_v49  ;;  %v1116_v49 = vld [vmem:[%s1745_s5] ss:$0 sm:$0xff] }
  0xf7   :  { %v474_v53 = vmax.f32 %v450_v50, 0.0 }
  0xfc   :  { %v451_v51 = vpop.f32.mrf.mxu3 }
  0xfd   :  { %v452_v52 = vadd.f32 %v1444_v62, %v451_v51 }
  0xff   :  { %v475_v54 = vmax.f32 %v452_v52, 0.0 }
 0x101   :  { %v485_v55 = vpack.c.bf16 %v475_v54, %v474_v53 }
 0x103   :  { %572 = vmatmul.bf16.vlgmr.msrb.gmra.mxu2 %v485_v55 }
 0x104   :  { %v454_v56 = vpop.f32.mrf.mxu3 }
 0x105   :  { %v455_v57 = vadd.f32 %v1444_v62, %v454_v56 }
 0x107   :  { %v476_v60 = vmax.f32 %v455_v57, 0.0 }
 0x10c   :  { %v456_v58 = vpop.f32.mrf.mxu3 }
 0x10d   :  { %v457_v59 = vadd.f32 %v1444_v62, %v456_v58 }
 0x10f   :  { %v477_v61 = vmax.f32 %v457_v59, 0.0 }
 0x111   :  { %v486_v63 = vpack.c.bf16 %v477_v61, %v476_v60 }
 0x113   :  { %577 = vmatmul.bf16.gmra.mxu2 %v486_v63 }
 0x114   :  { %v459_v0 = vpop.f32.mrf.mxu3 }
 0x115   :  { %v460_v1 = vadd.f32 %v1444_v62, %v459_v0 }
 0x117   :  { %v478_v4 = vmax.f32 %v460_v1, 0.0 }
 0x11c   :  { %v461_v2 = vpop.f32.mrf.mxu3 }
 0x11d   :  { %v462_v3 = vadd.f32 %v1444_v62, %v461_v2 }
 0x11f   :  { %v479_v5 = vmax.f32 %v462_v3, 0.0 }
 0x121   :  { %v487_v6 = vpack.c.bf16 %v479_v5, %v478_v4 }
 0x123   :  { %582 = vmatmul.bf16.gmra.mxu2 %v487_v6 }
 0x12e   :  { %v285_v7 = vpop.f32.mrf.mxu2 }
 0x12f   :  { %v1554_v53 = vadd.f32 %v1116_v49, %v285_v7 }
 0x130   :  { %v1492_v8 = vpop.f32.mrf.mxu0 }
 0x131   :  { %v289_v55 = vmul.f32 %v1554_v53, %v1554_v53  ;;  %v1565_v58 = vadd.f32 %v1115_v16, %v1492_v8 }
 0x133   :  { %v588_v59 = vmul.f32 %v1565_v58, %v1565_v58 }
 0x136   :  { %v287_v9 = vpop.f32.mrf.mxu2 }
 0x138   :  { %v550_v10 = vpop.f32.mrf.mxu0 }
 0x139   :  { %v1523_v36 = vadd.f32 %v1115_v16, %v550_v10 }
 0x13b   :  { %v589_v41 = vmul.f32 %v1523_v36, %v1523_v36 }
 0x140   :  { %v553_v11 = vpop.f32.mrf.mxu0 }
 0x141   :  { %v1541_v47 = vadd.f32 %v1115_v16, %v553_v11 }
 0x143   :  { %v590_v51 = vmul.f32 %v1541_v47, %v1541_v47 }
 0x148   :  { %v555_v12 = vpop.f32.mrf.mxu0 }
 0x149   :  { %v1560_v56 = vadd.f32 %v1115_v16, %v555_v12 }
 0x14b   :  { %v591_v57 = vmul.f32 %v1560_v56, %v1560_v56 }
 0x150   :  { %v558_v13 = vpop.f32.mrf.mxu0 }
 0x151   :  { %v1513_v29 = vadd.f32 %v1115_v16, %v558_v13 }
 0x153   :  { %v592_v33 = vmul.f32 %v1513_v29, %v1513_v29 }
 0x158   :  { %v560_v14 = vpop.f32.mrf.mxu0 }
 0x159   :  { %v1533_v42 = vadd.f32 %v1115_v16, %v560_v14 }
 0x15b   :  { %v593_v45 = vmul.f32 %v1533_v42, %v1533_v42 }
 0x160   :  { %v563_v18 = vpop.f32.mrf.mxu0 }
 0x161   :  { %v1552_v52 = vadd.f32 %v1115_v16, %v563_v18 }
 0x163   :  { %v594_v54 = vmul.f32 %v1552_v52, %v1552_v52 }
 0x168   :  { %v565_v23 = vpop.f32.mrf.mxu0 }
 0x169   :  { %v1505_v24 = vadd.f32 %v1115_v16, %v565_v23 }
 0x16b   :  { %v595_v28 = vmul.f32 %v1505_v24, %v1505_v24 }
 0x170   :  { %v568_v34 = vpop.f32.mrf.mxu0 }
 0x171   :  { %v1521_v35 = vadd.f32 %v1115_v16, %v568_v34 }
 0x173   :  { %v596_v40 = vmul.f32 %v1521_v35, %v1521_v35 }
 0x178   :  { %v570_v46 = vpop.f32.mrf.mxu0 }
 0x179   :  { %v1543_v48 = vadd.f32 %v1115_v16, %v570_v46 }
 0x17b   :  { %v597_v50 = vmul.f32 %v1543_v48, %v1543_v48 }
 0x186   :  { %v573_v15 = vpop.f32.mrf.mxu2 }
 0x187   :  { %v1501_v20 = vadd.f32 %v1115_v16, %v573_v15 }
 0x189   :  { %v598_v22 = vmul.f32 %v1501_v20, %v1501_v20 }
 0x18e   :  { %v575_v17 = vpop.f32.mrf.mxu2 }
 0x18f   :  { %v1497_v62 = vadd.f32 %v1115_v16, %v575_v17 }
 0x191   :  { %v599_v19 = vmul.f32 %v1497_v62, %v1497_v62 }
 0x193   :  { %626 = vadd.xlane.f32.xlu2 %v599_v19 }
 0x196   :  { %v578_v21 = vpop.f32.mrf.mxu2 }
 0x197   :  { %v1515_v30 = vadd.f32 %v1115_v16, %v578_v21 }
 0x199   :  { %v600_v32 = vmul.f32 %v1515_v30, %v1515_v30 }
 0x19b   :  { %624 = vadd.xlane.f32.xlu2 %v598_v22 }
 0x19e   :  { %v580_v25 = vpop.f32.mrf.mxu2 }
 0x19f   :  { %v1507_v26 = vadd.f32 %v1115_v16, %v580_v25 }
 0x1a1   :  { %v601_v27 = vmul.f32 %v1507_v26, %v1507_v26 }
 0x1a3   :  { %630 = vadd.xlane.f32.xlu1 %v601_v27  ;;  %618 = vadd.xlane.f32.xlu2 %v595_v28 }
 0x1a6   :  { %v583_v31 = vpop.f32.mrf.mxu2 }
 0x1a7   :  { %v1535_v43 = vadd.f32 %v1115_v16, %v583_v31 }
 0x1a9   :  { %v602_v44 = vmul.f32 %v1535_v43, %v1535_v43 }
 0x1ab   :  { %628 = vadd.xlane.f32.xlu1 %v600_v32  ;;  %612 = vadd.xlane.f32.xlu2 %v592_v33 }
 0x1ae   :  { %v585_v37 = vpop.f32.mrf.mxu2 }
 0x1af   :  { %v1525_v38 = vadd.f32 %v1115_v16, %v585_v37 }
 0x1b1   :  { %v603_v39 = vmul.f32 %v1525_v38, %v1525_v38 }
 0x1b3   :  { %634 = vadd.xlane.f32.xlu0 %v603_v39  ;;  %620 = vadd.xlane.f32.xlu1 %v596_v40 }
 0x1b4   :  { %606 = vadd.xlane.f32.xlu2 %v589_v41 }
 0x1bb   :  { %632 = vadd.xlane.f32.xlu0 %v602_v44  ;;  %614 = vadd.xlane.f32.xlu1 %v593_v45 }
 0x1c3   :  { %622 = vadd.xlane.f32.xlu0 %v597_v50  ;;  %608 = vadd.xlane.f32.xlu1 %v590_v51 }
 0x1cb   :  { %616 = vadd.xlane.f32.xlu0 %v594_v54  ;;  %290 = vadd.xlane.f32.xlu1 %v289_v55 }
 0x1d3   :  { %610 = vadd.xlane.f32.xlu0 %v591_v57 }
 0x1db   :  { %604 = vadd.xlane.f32.xlu0 %v588_v59 }
 0x206   :  { %v627_v60 = vpop.xlane.xlu2 %626 }
 0x207   :  { %v647_v61 = vmax.f32 %v627_v60, 1e-24 }
 0x209   :  { %1117 = vrsqrt.f32 %v647_v61  ;;  %vm768_vm1 = vweird.f32 %v647_v61 }
 0x20e   :  { %v625_v63 = vpop.xlane.xlu2 %624 }
 0x20f   :  { %v1118_v0 = vpop.eup %1117  ;;  %v646_v1 = vmax.f32 %v625_v63, 1e-24 }
 0x210   :  { %v763_v2 = vmul.f32 %v1118_v0, %v647_v61  ;;  %vm769_vm0 = vweird.f32 %v1118_v0 }
 0x211   :  { %1119 = vrsqrt.f32 %v646_v1  ;;  %vm770_vm2 = vmor %vm768_vm1, %vm769_vm0  ;;  %vm758_vm4 = vweird.f32 %v646_v1 }
 0x212   :  { %v764_v3 = vmul.f32 %v1118_v0, %v763_v2 }
 0x214   :  { %v765_v4 = vmul.f32 0.5, %v764_v3 }
 0x216   :  { %v766_v5 = vsub.f32 1.5, %v765_v4  ;;  %v631_v6 = vpop.xlane.xlu1 %630  ;;  %v619_v7 = vpop.xlane.xlu2 %618 }
 0x217   :  { %v1120_v8 = vpop.eup %1119  ;;  %v649_v9 = vmax.f32 %v631_v6, 1e-24  ;;  %v643_v10 = vmax.f32 %v619_v7, 1e-24 }
 0x218   :  { %v753_v11 = vmul.f32 %v1120_v8, %v646_v1  ;;  %v767_v12 = vmul.f32 %v1118_v0, %v766_v5  ;;  %vm759_vm3 = vweird.f32 %v1120_v8 }
 0x219   :  { %1121 = vrsqrt.f32 %v649_v9  ;;  %vm760_vm5 = vmor %vm758_vm4, %vm759_vm3  ;;  %vm788_vm7 = vweird.f32 %v649_v9  ;;  %vm728_vm10 = vweird.f32 %v643_v10 }
 0x21a   :  { %v754_v13 = vmul.f32 %v1120_v8, %v753_v11  ;;  %1123 = vrsqrt.f32 %v643_v10  ;;  %v771_v14 = vsel %vm770_vm2, %v1118_v0, %v767_v12 }
 0x21b   :  { %v1570_v15 = vmul.f32 %v771_v14, %v1497_v62 }
 0x21c   :  { %v755_v16 = vmul.f32 0.5, %v754_v13 }
 0x21d   :  { %839 = vst [vmem:[%s1751_s11 + $0x58] sm:$0xff] %v1570_v15 }
 0x21e   :  { %v756_v17 = vsub.f32 1.5, %v755_v16  ;;  %v629_v18 = vpop.xlane.xlu1 %628  ;;  %v613_v19 = vpop.xlane.xlu2 %612 }
 0x21f   :  { %v1122_v21 = vpop.eup %1121  ;;  %v1576_v22 = vmax.f32 %v629_v18, 1e-24  ;;  %v1578_v23 = vmax.f32 %v613_v19, 1e-24 }
 0x220   :  { %v1124_v25 = vpop.eup %1123  ;;  %v783_v27 = vmul.f32 %v1122_v21, %v649_v9  ;;  %v757_v62 = vmul.f32 %v1120_v8, %v756_v17  ;;  %vm789_vm6 = vweird.f32 %v1122_v21 }
 0x221   :  { %v723_v28 = vmul.f32 %v1124_v25, %v643_v10  ;;  %1125 = vrsqrt.f32 %v1576_v22  ;;  %vm790_vm8 = vmor %vm788_vm7, %vm789_vm6  ;;  %vm729_vm9 = vweird.f32 %v1124_v25  ;;  %vm778_vm13 = vweird.f32 %v1576_v22 }
 0x222   :  { %v784_v31 = vmul.f32 %v1122_v21, %v783_v27  ;;  %1127 = vrsqrt.f32 %v1578_v23  ;;  %v761_v32 = vsel %vm760_vm5, %v1120_v8, %v757_v62  ;;  %vm730_vm11 = vmor %vm728_vm10, %vm729_vm9  ;;  %vm698_vm0 = vweird.f32 %v1578_v23 }
 0x223   :  { %v724_v33 = vmul.f32 %v1124_v25, %v723_v28  ;;  %v1583_v34 = vmul.f32 %v761_v32, %v1501_v20 }
 0x224   :  { %v785_v37 = vmul.f32 0.5, %v784_v31 }
 0x225   :  { %v725_v39 = vmul.f32 0.5, %v724_v33  ;;  %838 = vst [vmem:[%s1751_s11 + $0x50] sm:$0xff] %v1583_v34 }
 0x226   :  { %v786_v40 = vsub.f32 1.5, %v785_v37  ;;  %v635_v41 = vpop.xlane.xlu0 %634  ;;  %v621_v44 = vpop.xlane.xlu1 %620 }
 0x227   :  { %v1126_v45 = vpop.eup %1125  ;;  %v726_v46 = vsub.f32 1.5, %v725_v39  ;;  %v1589_v49 = vmax.f32 %v635_v41, 1e-24  ;;  %v1591_v50 = vmax.f32 %v621_v44, 1e-24  ;;  %v607_v51 = vpop.xlane.xlu2 %606 }
 0x228   :  { %v1128_v20 = vpop.eup %1127  ;;  %v773_v54 = vmul.f32 %v1126_v45, %v1576_v22  ;;  %v1594_v55 = vmax.f32 %v607_v51, 1e-24  ;;  %v787_v57 = vmul.f32 %v1122_v21, %v786_v40  ;;  %vm779_vm12 = vweird.f32 %v1126_v45 }
 0x229   :  { %v693_v59 = vmul.f32 %v1128_v20, %v1578_v23  ;;  %1129 = vrsqrt.f32 %v1589_v49  ;;  %v727_v1 = vmul.f32 %v1124_v25, %v726_v46  ;;  %vm780_vm14 = vmor %vm778_vm13, %vm779_vm12  ;;  %vm699_vm15 = vweird.f32 %v1128_v20 }
 0x22a   :  { %v774_v60 = vmul.f32 %v1126_v45, %v773_v54  ;;  %1131 = vrsqrt.f32 %v1591_v50  ;;  %v791_v61 = vsel %vm790_vm8, %v1122_v21, %v787_v57  ;;  %vm700_vm1 = vmor %vm698_vm0, %vm699_vm15  ;;  %vm808_vm3 = vweird.f32 %v1589_v49 }
 0x22b   :  { %v694_v63 = vmul.f32 %v1128_v20, %v693_v59  ;;  %1133 = vrsqrt.f32 %v1594_v55  ;;  %v1601_v0 = vmul.f32 %v791_v61, %v1507_v26  ;;  %v731_v4 = vsel %vm730_vm11, %v1124_v25, %v727_v1 }
 0x22c   :  { %v775_v2 = vmul.f32 0.5, %v774_v60  ;;  %v1608_v8 = vmul.f32 %v731_v4, %v1505_v24  ;;  %vm738_vm5 = vweird.f32 %v1591_v50  ;;  %vm668_vm8 = vweird.f32 %v1594_v55 }
 0x22d   :  { %v695_v3 = vmul.f32 0.5, %v694_v63  ;;  %841 = vst [vmem:[%s1751_s11 + $0x68] sm:$0xff] %v1601_v0 }
 0x22e   :  { %v776_v5 = vsub.f32 1.5, %v775_v2  ;;  %v633_v6 = vpop.xlane.xlu0 %632  ;;  %v615_v7 = vpop.xlane.xlu1 %614  ;;  %835 = vst [vmem:[%s1751_s11 + $0x38] sm:$0xff] %v1608_v8 }
 0x22f   :  { %v1130_v9 = vpop.eup %1129  ;;  %v696_v26 = vsub.f32 1.5, %v695_v3  ;;  %v1610_v10 = vmax.f32 %v633_v6, 1e-24  ;;  %v1612_v11 = vmax.f32 %v615_v7, 1e-24 }
 0x230   :  { %v1132_v12 = vpop.eup %1131  ;;  %v803_v13 = vmul.f32 %v1130_v9, %v1589_v49  ;;  %v777_v14 = vmul.f32 %v1126_v45, %v776_v5  ;;  %vm809_vm2 = vweird.f32 %v1130_v9 }
 0x231   :  { %v1620_v16 = vpop.eup %1133  ;;  %v733_v24 = vmul.f32 %v1132_v12, %v1591_v50  ;;  %1135 = vrsqrt.f32 %v1610_v10  ;;  %v697_v25 = vmul.f32 %v1128_v20, %v696_v26  ;;  %vm739_vm4 = vweird.f32 %v1132_v12  ;;  %vm810_vm6 = vmor %vm808_vm3, %vm809_vm2 }
 0x232   :  { %v804_v17 = vmul.f32 %v1130_v9, %v803_v13  ;;  %v663_v18 = vmul.f32 %v1620_v16, %v1594_v55  ;;  %1137 = vrsqrt.f32 %v1612_v11  ;;  %v781_v19 = vsel %vm780_vm14, %v1126_v45, %v777_v14  ;;  %vm740_vm9 = vmor %vm738_vm5, %vm739_vm4 }
 0x233   :  { %v734_v21 = vmul.f32 %v1132_v12, %v733_v24  ;;  %v1629_v22 = vmul.f32 %v781_v19, %v1515_v30  ;;  %v701_v31 = vsel %vm700_vm1, %v1128_v20, %v697_v25  ;;  %vm669_vm7 = vweird.f32 %v1620_v16 }
 0x234   :  { %v805_v27 = vmul.f32 0.5, %v804_v17  ;;  %v664_v62 = vmul.f32 %v1620_v16, %v663_v18  ;;  %v1637_v30 = vmul.f32 %v701_v31, %v1513_v29  ;;  %vm670_vm10 = vmor %vm668_vm8, %vm669_vm7  ;;  %vm798_vm12 = vweird.f32 %v1610_v10 }
 0x235   :  { %v735_v28 = vmul.f32 0.5, %v734_v21  ;;  %840 = vst [vmem:[%s1751_s11 + $0x60] sm:$0xff] %v1629_v22  ;;  %vm708_vm14 = vweird.f32 %v1612_v11 }
 0x236   :  { %v806_v32 = vsub.f32 1.5, %v805_v27  ;;  %v665_v33 = vmul.f32 0.5, %v664_v62  ;;  %v623_v37 = vpop.xlane.xlu0 %622  ;;  %v609_v23 = vpop.xlane.xlu1 %608  ;;  %832 = vst [vmem:[%s1751_s11 + $0x20] sm:$0xff] %v1637_v30 }
 0x237   :  { %v1136_v39 = vpop.eup %1135  ;;  %v736_v40 = vsub.f32 1.5, %v735_v28  ;;  %v1640_v41 = vmax.f32 %v623_v37, 1e-24  ;;  %v1642_v44 = vmax.f32 %v609_v23, 1e-24 }
 0x238   :  { %v1138_v45 = vpop.eup %1137  ;;  %v666_v46 = vsub.f32 1.5, %v665_v33  ;;  %v793_v51 = vmul.f32 %v1136_v39, %v1610_v10  ;;  %v807_v20 = vmul.f32 %v1130_v9, %v806_v32  ;;  %vm799_vm11 = vweird.f32 %v1136_v39 }
 0x239   :  { %v703_v29 = vmul.f32 %v1138_v45, %v1612_v11  ;;  %1139 = vrsqrt.f32 %v1640_v41  ;;  %v737_v57 = vmul.f32 %v1132_v12, %v736_v40  ;;  %vm709_vm13 = vweird.f32 %v1138_v45  ;;  %vm800_vm15 = vmor %vm798_vm12, %vm799_vm11 }
 0x23a   :  { %v794_v49 = vmul.f32 %v1136_v39, %v793_v51  ;;  %1141 = vrsqrt.f32 %v1642_v44  ;;  %v811_v54 = vsel %vm810_vm6, %v1130_v9, %v807_v20  ;;  %v667_v50 = vmul.f32 %v1620_v16, %v666_v46  ;;  %vm710_vm0 = vmor %vm708_vm14, %vm709_vm13 }
 0x23b   :  { %v704_v59 = vmul.f32 %v1138_v45, %v703_v29  ;;  %v827_v60 = vmul.f32 %v811_v54, %v1525_v38  ;;  %v741_v63 = vsel %vm740_vm9, %v1132_v12, %v737_v57  ;;  %vm748_vm2 = vweird.f32 %v1640_v41 }
 0x23c   :  { %v795_v61 = vmul.f32 0.5, %v794_v49  ;;  %v1662_v2 = vmul.f32 %v741_v63, %v1521_v35  ;;  %v671_v55 = vsel %vm670_vm10, %v1620_v16, %v667_v50  ;;  %vm678_vm5 = vweird.f32 %v1642_v44 }
 0x23d   :  { %v705_v1 = vmul.f32 0.5, %v704_v59  ;;  %843 = vst [vmem:[%s1751_s11 + $0x78] sm:$0xff] %v827_v60  ;;  %845 = vmatpush.xpose.msrb.mxu1 %v827_v60  ;;  %v1666_v5 = vmul.f32 %v671_v55, %v1523_v36 }
 0x23e   :  { %v796_v3 = vsub.f32 1.5, %v795_v61  ;;  %v617_v4 = vpop.xlane.xlu0 %616  ;;  %v291_v38 = vpop.xlane.xlu1 %290  ;;  %836 = vst [vmem:[%s1751_s11 + $0x40] sm:$0xff] %v1662_v2 }
 0x23f   :  { %v1140_v6 = vpop.eup %1139  ;;  %v706_v7 = vsub.f32 1.5, %v705_v1  ;;  %v1668_v9 = vmax.f32 %v617_v4, 1e-24  ;;  %v1670_v26 = vmax.f32 %v291_v38, 1e-24  ;;  %829 = vst [vmem:[%s1751_s11 + $0x8] sm:$0xff] %v1666_v5 }
 0x240   :  { %v1142_v35 = vpop.eup %1141  ;;  %v743_v12 = vmul.f32 %v1140_v6, %v1640_v41  ;;  %v797_v13 = vmul.f32 %v1136_v39, %v796_v3  ;;  %vm749_vm1 = vweird.f32 %v1140_v6 }
 0x241   :  { %v673_v36 = vmul.f32 %v1142_v35, %v1642_v44  ;;  %1143 = vrsqrt.f32 %v1668_v9  ;;  %v707_v16 = vmul.f32 %v1138_v45, %v706_v7  ;;  %vm679_vm3 = vweird.f32 %v1142_v35  ;;  %vm750_vm4 = vmor %vm748_vm2, %vm749_vm1 }
 0x242   :  { %v744_v14 = vmul.f32 %v1140_v6, %v743_v12  ;;  %1145 = vrsqrt.f32 %v1670_v26  ;;  %v801_v10 = vsel %vm800_vm15, %v1136_v39, %v797_v13  ;;  %vm680_vm6 = vmor %vm678_vm5, %vm679_vm3  ;;  %vm718_vm9 = vweird.f32 %v1668_v9 }
 0x243   :  { %v674_v24 = vmul.f32 %v1142_v35, %v673_v36  ;;  %v826_v17 = vmul.f32 %v801_v10, %v1535_v43  ;;  %v711_v19 = vsel %vm710_vm0, %v1138_v45, %v707_v16  ;;  %vm299_vm10 = vweird.f32 %v1670_v26 }
 0x244   :  { %v745_v18 = vmul.f32 0.5, %v744_v14  ;;  %v1692_v11 = vmul.f32 %v711_v19, %v1533_v42 }
 0x245   :  { %v675_v21 = vmul.f32 0.5, %v674_v24  ;;  %842 = vst [vmem:[%s1751_s11 + $0x70] sm:$0xff] %v826_v17  ;;  %846 = vmatpush.xpose.msrb.mxu1 %v826_v17 }
 0x246   :  { %v746_v25 = vsub.f32 1.5, %v745_v18  ;;  %v611_v27 = vpop.xlane.xlu0 %610  ;;  %833 = vst [vmem:[%s1751_s11 + $0x28] sm:$0xff] %v1692_v11 }
 0x247   :  { %v1144_v62 = vpop.eup %1143  ;;  %v676_v28 = vsub.f32 1.5, %v675_v21  ;;  %v639_v31 = vmax.f32 %v611_v27, 1e-24 }
 0x248   :  { %v1146_v43 = vpop.eup %1145  ;;  %v713_v32 = vmul.f32 %v1144_v62, %v1668_v9  ;;  %v747_v33 = vmul.f32 %v1140_v6, %v746_v25  ;;  %vm719_vm7 = vweird.f32 %v1144_v62 }
 0x249   :  { %v294_v42 = vmul.f32 %v1146_v43, %v1670_v26  ;;  %1147 = vrsqrt.f32 %v639_v31  ;;  %847 = vmatpush.xpose.msrb.mxu1 %v1601_v0  ;;  %v677_v39 = vmul.f32 %v1142_v35, %v676_v28  ;;  %vm300_vm8 = vweird.f32 %v1146_v43  ;;  %vm720_vm11 = vmor %vm718_vm9, %vm719_vm7 }
 0x24a   :  { %v714_v37 = vmul.f32 %v1144_v62, %v713_v32  ;;  %v751_v23 = vsel %vm750_vm4, %v1140_v6, %v747_v33  ;;  %vm301_vm12 = vmor %vm299_vm10, %vm300_vm8  ;;  %vm688_vm14 = vweird.f32 %v639_v31 }
 0x24b   :  { %v295_v40 = vmul.f32 %v1146_v43, %v294_v42  ;;  %v821_v45 = vmul.f32 %v751_v23, %v1543_v48  ;;  %v681_v46 = vsel %vm680_vm6, %v1142_v35, %v677_v39 }
 0x24c   :  { %v715_v41 = vmul.f32 0.5, %v714_v37  ;;  %v814_v0 = vmul.f32 %v681_v46, %v1541_v47 }
 0x24d   :  { %v296_v51 = vmul.f32 0.5, %v295_v40  ;;  %848 = vmatpush.xpose.msrb.mxu1 %v1629_v22  ;;  %837 = vst [vmem:[%s1751_s11 + $0x48] sm:$0xff] %v821_v45 }
 0x24e   :  { %v716_v20 = vsub.f32 1.5, %v715_v41  ;;  %v605_v44 = vpop.xlane.xlu0 %604  ;;  %830 = vst [vmem:[%s1751_s11 + $0x10] sm:$0xff] %v814_v0 }
 0x24f   :  { %v1148_v29 = vpop.eup %1147  ;;  %v297_v49 = vsub.f32 1.5, %v296_v51  ;;  %v636_v54 = vmax.f32 %v605_v44, 1e-24 }
 0x250   :  { %v683_v48 = vmul.f32 %v1148_v29, %v639_v31  ;;  %v717_v22 = vmul.f32 %v1144_v62, %v716_v20  ;;  %vm689_vm13 = vweird.f32 %v1148_v29 }
 0x251   :  { %v298_v57 = vmul.f32 %v1146_v43, %v297_v49  ;;  %1149 = vrsqrt.f32 %v636_v54  ;;  %849 = vmatpush.xpose.msrb.mxu1 %v1570_v15  ;;  %vm690_vm15 = vmor %vm688_vm14, %vm689_vm13  ;;  %vm658_vm1 = vweird.f32 %v636_v54 }
 0x252   :  { %v684_v47 = vmul.f32 %v1148_v29, %v683_v48  ;;  %v721_v59 = vsel %vm720_vm11, %v1144_v62, %v717_v22 }
 0x253   :  { %v818_v60 = vmul.f32 %v721_v59, %v1552_v52  ;;  %v302_v50 = vsel %vm301_vm12, %v1146_v43, %v298_v57 }
 0x254   :  { %v685_v61 = vmul.f32 0.5, %v684_v47  ;;  %v303_v63 = vmul.f32 %v302_v50, %v1554_v53 }
 0x255   :  { %850 = vmatpush.xpose.msrb.mxu1 %v1583_v34  ;;  %834 = vst [vmem:[%s1751_s11 + $0x30] sm:$0xff] %v818_v60 }
 0x256   :  { %v686_v1 = vsub.f32 1.5, %v685_v61  ;;  %305 = vst [vmem:[#allocation3] sm:$0xff] %v303_v63 }
 0x257   :  { %v1150_v15 = vpop.eup %1149  ;;  %877 = dma.vmem_to_hbm [thread:$0]  %s873_s26, 128, %s875_s1, [#allocation4]  }
 0x258   :  { %v653_v55 = vmul.f32 %v1150_v15, %v636_v54  ;;  %v687_v3 = vmul.f32 %v1148_v29, %v686_v1  ;;  %vm659_vm0 = vweird.f32 %v1150_v15 }
 0x259   :  { %851 = vmatpush.xpose.msrb.mxu1 %v821_v45  ;;  %vm660_vm2 = vmor %vm658_vm1, %vm659_vm0 }
 0x25a   :  { %v654_v52 = vmul.f32 %v1150_v15, %v653_v55  ;;  %v691_v4 = vsel %vm690_vm15, %v1148_v29, %v687_v3 }
 0x25b   :  { %v815_v38 = vmul.f32 %v691_v4, %v1560_v56 }
 0x25c   :  { %v655_v53 = vmul.f32 0.5, %v654_v52 }
 0x25d   :  { %852 = vmatpush.xpose.msrb.mxu1 %v1662_v2  ;;  %831 = vst [vmem:[%s1751_s11 + $0x18] sm:$0xff] %v815_v38 }
 0x25e   :  { %v656_v34 = vsub.f32 1.5, %v655_v53 }
 0x260   :  { %v657_v6 = vmul.f32 %v1150_v15, %v656_v34 }
 0x261   :  { %853 = vmatpush.xpose.msrb.mxu1 %v1608_v8 }
 0x262   :  { %v661_v7 = vsel %vm660_vm2, %v1150_v15, %v657_v6 }
 0x263   :  { %v812_v9 = vmul.f32 %v661_v7, %v1565_v58 }
 0x265   :  { %854 = vmatpush.xpose.msrb.mxu1 %v818_v60  ;;  %828 = vst [vmem:[%s1751_s11] sm:$0xff] %v812_v9  ;;  %s1204_s11 = smov [#allocation5]  }
 0x266   :  { %s885_s6 = sshll.u32 %s1204_s11, 4  ;;  %s886_s6 = int_to_ptr.vmem [resolvable:$true] %s885_s6 }
 0x269   :  { %855 = vmatpush.xpose.msrb.mxu1 %v1692_v11 }
 0x26d   :  { %856 = vmatpush.xpose.msrb.mxu1 %v1637_v30 }
 0x271   :  { %857 = vmatpush.xpose.msrb.mxu1 %v815_v38 }
 0x275   :  { %858 = vmatpush.xpose.msrb.mxu1 %v814_v0 }
 0x279   :  { %859 = vmatpush.xpose.msrb.mxu1 %v1666_v5 }
 0x27d   :  { %860 = vmatpush.xpose.msrb.mxu1 %v812_v9 }
 0x280   :  { %861 = vmatmul.f32.vlgmr.msrb.gmra.mxu1 %v303_v63 }
 0x2fd   :  { %v862_v56 = vpop.f32.mrf.mxu1 }
 0x2fe   :  { %v865_v58 = vmul.f32 100.0, %v862_v56 }
 0x300   :  { %866 = vst [vmem:[#allocation5] sm:$0xff] %v865_v58 }
 0x301   :  { %890 = dma.vmem_to_hbm [thread:$0]  %s886_s6, 128, %s888_s7, [#allocation6]  }
 0x302   :  { %1199 = dma.done.wait [#allocation4], 128  }
 0x303   :  { %1200 = vsyncadd [#allocation4], 4294967168 }
 0x304   :  { %1201 = dma.done.wait [#allocation6], 128  }
 0x305   :  { %1202 = vsyncadd [#allocation6], 4294967168 }
 0x306   :  { %901 = vsyncpa [#allocation4], 1 }
 0x307   :  { %902 = vsyncpa [#allocation6], 1 }

</bundles_post_ra>
